<compile_context>
chip_gen: v5e
topology: v5e:2x2
jax: 0.10.0
libtpu: 0.0.40
codegen_flags: <defaults>
</compile_context>

<pallas_src>
import jax
import jax.numpy as jnp
from jax.experimental import pallas as pl
from jax.experimental.pallas import tpu as pltpu


def _round_up(x: int, m: int) -> int:
    return ((x + m - 1) // m) * m


def _pick_tile(padded_total: int, t_max: int, base: int = 128) -> int:
    """Largest multiple of `base` that divides `padded_total` and is <= t_max."""
    best = base
    t = base
    limit = min(t_max, padded_total)
    while t <= limit:
        if padded_total % t == 0:
            best = t
        t += base
    return best


def _abs_pos_emb_kernel(q_ref, emb_ref, o_ref):
    # q_ref: (TM, D), emb_ref: (D, TJ), o_ref: (TM, TJ)
    o_ref[...] = jnp.dot(
        q_ref[...], emb_ref[...], preferred_element_type=jnp.float32
    ).astype(o_ref.dtype)


def abs_pos_emb(q, height_param, width_param, *,
                tm_max=1024, tj_max=2048, j_resident_max=2048):
    """q: (B, heads, I, D); height_param: (H, D); width_param: (W, D).

    Returns logits of shape (B, heads, I, H*W), matching
    einsum('b h i d, j d -> b h i j', q, emb) with
    emb = (height[:, None, :] + width[None, :, :]).reshape(H*W, D).
    """
    B, NH, I, D = q.shape
    H, _ = height_param.shape
    W, _ = width_param.shape
    J = H * W

    # ---- Build emb once in the wrapper, cast to q.dtype, transposed (D, J). ----
    emb = (height_param[:, None, :] + width_param[None, :, :]).reshape(J, D)
    emb_t = emb.T.astype(q.dtype)  # (D, J)

    # ---- Minimal lane padding: J up to the next multiple of 128 only. ----
    Jp = _round_up(J, 128)
    if Jp != J:
        emb_t = jnp.pad(emb_t, ((0, 0), (0, Jp - J)))

    # ---- Collapse (B, heads, I) into M; minimal padding to a 128 multiple. ----
    M = B * NH * I
    Mp = _round_up(M, 128)
    q_flat = q.reshape(M, D)
    if Mp != M:
        q_flat = jnp.pad(q_flat, ((0, Mp - M), (0, 0)))

    # ---- Tile selection. ----
    # M tile: big (amortize per-step overhead) but leave >= 2 M blocks when
    # possible so v7x's two TensorCores both get work on the parallel axis.
    tm_cap = tm_max if Mp < 2 * 128 else min(tm_max, Mp // 2)
    tm = _pick_tile(Mp, tm_cap)

    # J tile: keep emb fully resident (no J grid axis) when it is small enough;
    # otherwise tile J with an exact 128-multiple divisor of Jp.
    if Jp <= j_resident_max:
        tj = Jp
    else:
        tj = _pick_tile(Jp, tj_max)

    # ---- VMEM budget from actual tiles (double-buffered in/out) + headroom. ----
    dbytes = jnp.dtype(q.dtype).itemsize
    tile_bytes = 2 * (tm * D + D * tj + tm * tj) * dbytes + tm * tj * 4  # f32 acc
    vmem_limit = min(32 * 1024 * 1024, max(4 * 1024 * 1024, int(tile_bytes * 1.5)))

    if tj == Jp:
        # Single parallel M axis; emb resident via constant index_map.
        grid = (Mp // tm,)
        in_specs = [
            pl.BlockSpec((tm, D), lambda m: (m, 0)),   # q M-tile (full D)
            pl.BlockSpec((D, Jp), lambda m: (0, 0)),   # resident emb (D, Jp)
        ]
        out_specs = pl.BlockSpec((tm, Jp), lambda m: (m, 0))
        dim_sem = ("parallel",)
    else:
        grid = (Mp // tm, Jp // tj)
        in_specs = [
            pl.BlockSpec((tm, D), lambda m, j: (m, 0)),
            pl.BlockSpec((D, tj), lambda m, j: (0, j)),
        ]
        out_specs = pl.BlockSpec((tm, tj), lambda m, j: (m, j))
        dim_sem = ("parallel", "parallel")

    out = pl.pallas_call(
        _abs_pos_emb_kernel,
        out_shape=jax.ShapeDtypeStruct((Mp, Jp), q.dtype),
        grid=grid,
        in_specs=in_specs,
        out_specs=out_specs,
        compiler_params=pltpu.CompilerParams(
            dimension_semantics=dim_sem,
            vmem_limit_bytes=vmem_limit,
        ),
    )(q_flat, emb_t)

    # Strip padding only if it was applied; restore (B, heads, I, J).
    if Mp != M or Jp != J:
        out = out[:M, :J]
    return out.reshape(B, NH, I, J)


if __name__ == "__main__":
    # Small, module-consistent shapes.
    fmap_h = fmap_w = 8          # height == width (asserted in the module)
    dim_head = 32
    batch, heads = 2, 4
    seq = fmap_h * fmap_w        # i == number of spatial positions

    key = jax.random.PRNGKey(0)
    k_h, k_w, k_q = jax.random.split(key, 3)

    scale = dim_head ** (-0.5)
    height_param = jax.random.normal(k_h, (fmap_h, dim_head), jnp.float32) * scale
    width_param = jax.random.normal(k_w, (fmap_w, dim_head), jnp.float32) * scale
    q = jax.random.normal(k_q, (batch, heads, seq, dim_head), jnp.float32)

    logits = abs_pos_emb(q, height_param, width_param)
    logits = jax.block_until_ready(logits)

    # Reference in plain JAX (mirrors the PyTorch forward).
    emb_ref = (height_param[:, None, :] + width_param[None, :, :]).reshape(-1, dim_head)
    logits_ref = jnp.einsum("bhid,jd->bhij", q, emb_ref)

    assert logits.shape == (batch, heads, seq, fmap_h * fmap_w)
    assert jnp.allclose(logits, logits_ref, atol=1e-5, rtol=1e-5)

    print("KERNEL_OK")
</pallas_src>

<mosaic_0001>
module attributes {stable_mosaic.version = 11 : i64} {
  func.func @_abs_pos_emb_kernel(%arg0: i32, %arg1: memref<256x32xf32, #tpu.memory_space<vmem>>, %arg2: memref<32x128xf32, #tpu.memory_space<vmem>>, %arg3: memref<256x128xf32, #tpu.memory_space<vmem>>) attributes {dimension_semantics = [#tpu.dimension_semantics<parallel>], iteration_bounds = array<i64: 2>, scalar_prefetch = 0 : i64, scratch_operands = 0 : i64, tpu.core_type = #tpu.core_type<tc>, window_params = [{transform_indices = @transform_0, window_bounds = array<i64: 256, 32>}, {pipeline_mode = #tpu.pipeline_mode<synchronous>, transform_indices = @transform_1, window_bounds = array<i64: 32, 128>}, {transform_indices = @transform_2, window_bounds = array<i64: 256, 128>}]} {
    %c0 = arith.constant 0 : index
    %c0_0 = arith.constant 0 : index
    %0 = vector.load %arg1[%c0, %c0_0] : memref<256x32xf32, #tpu.memory_space<vmem>>, vector<256x32xf32>
    %c0_1 = arith.constant 0 : index
    %c0_2 = arith.constant 0 : index
    %1 = vector.load %arg2[%c0_1, %c0_2] : memref<32x128xf32, #tpu.memory_space<vmem>>, vector<32x128xf32>
    %cst = arith.constant dense<0.000000e+00> : vector<256x128xf32>
    %2 = tpu.matmul %0, %1, %cst {dimension_numbers = #tpu.dot_dimension_numbers<[1], [0], [0], [1], [0, 0, 1, 1], [], []>} : vector<256x32xf32>, vector<32x128xf32>, vector<256x128xf32> -> vector<256x128xf32>
    %c0_3 = arith.constant 0 : index
    %c0_4 = arith.constant 0 : index
    %3 = vector.load %arg3[%c0_3, %c0_4] : memref<256x128xf32, #tpu.memory_space<vmem>>, vector<256x128xf32>
    tpu.vector_store %arg3[%c0_3, %c0_4], %2 {strides = array<i32>} : memref<256x128xf32, #tpu.memory_space<vmem>>, vector<256x128xf32>,
    return
  }
  func.func @transform_0(%arg0: i32) -> (i32, i32) {
    %c0_i32 = arith.constant 0 : i32
    %c0_i32_0 = arith.constant 0 : i32
    return %arg0, %c0_i32 : i32, i32
  }
  func.func @transform_1(%arg0: i32) -> (i32, i32) {
    %c0_i32 = arith.constant 0 : i32
    %c0_i32_0 = arith.constant 0 : i32
    %c0_i32_1 = arith.constant 0 : i32
    return %c0_i32, %c0_i32_0 : i32, i32
  }
  func.func @transform_2(%arg0: i32) -> (i32, i32) {
    %c0_i32 = arith.constant 0 : i32
    %c0_i32_0 = arith.constant 0 : i32
    return %arg0, %c0_i32 : i32, i32
  }
}

</mosaic_0001>

<bundles_post_ra>
// kernel: tpu_custom_call.1
= control target key start
LH: loop header
LB: loop body
LE: loop exit
PB: predicated region body
PF: predicated region fallthrough
CT: control target
= control target key end

     0   :  { %7 = vsyncpa [#allocation3], 0  ;;  %s881_s0 = inlined_call_operand.vmem [shape: f32[512,32], index: 0, kind: input, shape index: {}]   ;;  %s882_s1 = inlined_call_operand.vmem [shape: f32[32,128], index: 1, kind: input, shape index: {}]   ;;  %s883_s2 = inlined_call_operand.hbm [shape: f32[512,128], index: 2, kind: output, shape index: {}]  }
   0x1   :  { %9 = vsyncpa [#allocation3 + $0x1], 0  ;;  %s680_s9 = smov 0   ;;  %s682_s10 = smov 0  }
   0x2   :  { %s684_s11 = smov 0   ;;  %s686_s12 = smov 0  }
   0x3 LB: > { %s701_s13 = sadd.s32 4294967295, %s661_s12   ;;  %s501_s14 = sadd.s32 4294967294, %s661_s12   ;;  %s661_s12 = sphi %s686_s12, %s889_s12   ;;  %s657_s11 = sphi %s684_s11, %s888_s11   ;;  %s653_s10 = sphi %s682_s10, %s887_s10   ;;  %s649_s9 = sphi %s680_s9, %s886_s9  }
   0x4   : > { %s705_s15 = sadd.s32 1, %s661_s12   ;;  %s69_s16 = sadd.s32 1, %s657_s11 }
   0x5   : > { %s66_s17 = ssub.s32 %s661_s12, %s705_s15  ;;  %p79_p0 = scmp.ne.s32.totalorder %s657_s11, %s653_s10 }
   0x6   : > { %p67_p1 = scmp.eq.s32.totalorder %s66_s17, 0  ;;  %p80_p2 = scmp.eq.s32.totalorder %s701_s13, 1 }
   0x7   : > { %p85_p3 = scmp.ne.s32.totalorder %s653_s10, %s649_s9  ;;  %p86_p4 = scmp.eq.s32.totalorder %s501_s14, 1 }
   0x8   : > { %s716_s18 = scalar_select %p67_p1, %s657_s11, %s69_s16  }
   0x9   : > { %p718_p5 = por %p80_p2, %p79_p0  ;;  %p722_p6 = por %p86_p4, %p85_p3 }
   0xa   : > { %p504_p7 = scmp.ge.s32.totalorder %s661_s12, 1  ;;  %p116_p8 = scmp.lt.s32.totalorder %s661_s12, 3 }
   0xc   : > { %p117_p9 = pnand %p504_p7, %p116_p8 }
   0xd   : > { %s506_s25 = sshll.u32 (!%p117_p9), %s701_s13, 5  ;;  %s135_s6 = sand.u32 (!%p117_p9), 1, %s653_s10  }
   0xe   : > { %120 = sbr.rel (%p117_p9) target bundleno = 220 (0xdc), region = 28  ;;  %p139_p10 = scmp.lt.s32.totalorder (!%p117_p9), %s506_s25, 63 }
   0xf   : > { %s505_s7 = sshll.u32 (!%p117_p9), %s135_s6, 8  ;;  %s545_s14 = sshll.u32 (!%p117_p9), %s701_s13, 8 }
  0x10   : > { %s813_s8 = scalar_lea.vmem (!%p117_p9), [#allocation2], %s505_s7  ;;  %s435_s21 = scalar_lea.hbm (!%p117_p9), %s883_s2, %s545_s14 }
  0x11   : > { %s436_s22 = sshll.u32 (!%p117_p9), %s813_s8, 4  ;;  %s438_s23 = sshll.u32 (!%p117_p9), %s435_s21, 4  ;;  %s437_s22 = int_to_ptr.vmem [resolvable:$true] %s436_s22  ;;  %s439_s23 = int_to_ptr.hbm [resolvable:$true] %s438_s23 }
  0x12   : > { %s424_s13 = scalar_lea.sflag (!%p117_p9), [#allocation3], %s135_s6  ;;  %s613_s24 = sshra.s32 (!%p117_p9), %s439_s23, 4  ;;  %s614_s24 = int_to_ptr.hbm [resolvable:$true] %s613_s24 }
  0x13   : > { %v180_v0 = vld [vmem:[%s882_s1 + $0x18] sm:$0xff]  ;;  %v179_v1 = vld [vmem:[%s882_s1 + $0x10] sm:$0xff]  ;;  %v178_v2 = vld [vmem:[%s882_s1 + $0x8] sm:$0xff]  ;;  %s891_s25 = smov (!%p139_p10, %s506_s25), 63  ;;  %vm181_vm0 = vcmask 261120   ;;  %s619_s28 = scalar_lea.hbm %s883_s2, 512 }
  0x14   : > { %547 = vmatpush.msra.mxu2 %v180_v0  ;;  %548 = vmatpush.msra.mxu3 %v180_v0  ;;  %v177_v3 = vld [vmem:[%s882_s1] sm:$0xff]  ;;  %s507_s30 = sshll.u32 %s891_s25, 3  ;;  %s615_s25 = scalar_lea.hbm %s614_s24, 256 }
  0x15   : > { %290 = vmatpush.msra.mxu0 %v180_v0  ;;  %546 = vmatpush.msra.mxu1 %v180_v0  ;;  %s744_s5 = scalar_lea.vmem %s881_s0, %s507_s30  ;;  %p616_p11 = scmp.ne.s32.totalorder %s614_s24, %s615_s25 }
  0x16   : > { %550 = vmatpush.msra.mxu2 %v179_v1  ;;  %551 = vmatpush.msra.mxu3 %v179_v1  ;;  %v161_v4 = vld [vmem:[%s744_s5 + $0x80] sm:$0xff]  ;;  %v162_v8 = vld [vmem:[%s744_s5 + $0x88] sm:$0xff]  ;;  %v163_v12 = vld [vmem:[%s744_s5 + $0x90] sm:$0xff]  ;;  %p620_p0 = scmp.lt.s32.totalorder %s614_s24, %s883_s2  ;;  %p621_p1 = scmp.lt.s32.totalorder %s619_s28, %s615_s25 }
  0x17   : > { %291 = vmatpush.msra.mxu0 %v179_v1  ;;  %549 = vmatpush.msra.mxu1 %v179_v1  ;;  %v169_v5 = vld [vmem:[%s744_s5 + $0xc0] sm:$0xff]  ;;  %v170_v9 = vld [vmem:[%s744_s5 + $0xc8] sm:$0xff]  ;;  %v171_v13 = vld [vmem:[%s744_s5 + $0xd0] sm:$0xff]  ;;  %p617_p12 = pnand %p616_p11, %p718_p5 }
  0x18   : > { %553 = vmatpush.msra.mxu2 %v178_v2  ;;  %554 = vmatpush.msra.mxu3 %v178_v2  ;;  %v145_v6 = vld [vmem:[%s744_s5] sm:$0xff]  ;;  %v146_v10 = vld [vmem:[%s744_s5 + $0x8] sm:$0xff]  ;;  %v147_v14 = vld [vmem:[%s744_s5 + $0x10] sm:$0xff]  ;;  %p622_p2 = por %p621_p1, %p620_p0 }
  0x19   : > { %292 = vmatpush.msra.mxu0 %v178_v2  ;;  %552 = vmatpush.msra.mxu1 %v178_v2  ;;  %v153_v7 = vld [vmem:[%s744_s5 + $0x40] sm:$0xff]  ;;  %v154_v11 = vld [vmem:[%s744_s5 + $0x48] sm:$0xff]  ;;  %v155_v15 = vld [vmem:[%s744_s5 + $0x50] sm:$0xff]  ;;  %p618_p13 = pneg %p617_p12 }
  0x1a   : > { %556 = vmatpush.msra.mxu2 %v177_v3  ;;  %557 = vmatpush.msra.mxu3 %v177_v3  ;;  %v164_v16 = vld [vmem:[%s744_s5 + $0x98] sm:$0xff]  ;;  %v165_v20 = vld [vmem:[%s744_s5 + $0xa0] sm:$0xff]  ;;  %v166_v24 = vld [vmem:[%s744_s5 + $0xa8] sm:$0xff] }
  0x1b   : > { %524 = vmatmul.msk.f32.vlgmr.msra.gmra.mxu2 %vm181_vm0, %v161_v4  ;;  %532 = vmatmul.msk.f32.vlgmr.msra.gmra.mxu3 %vm181_vm0, %v169_v5  ;;  %v172_v17 = vld [vmem:[%s744_s5 + $0xd8] sm:$0xff]  ;;  %v173_v21 = vld [vmem:[%s744_s5 + $0xe0] sm:$0xff]  ;;  %v174_v25 = vld [vmem:[%s744_s5 + $0xe8] sm:$0xff]  ;;  %p623_p3 = pnand %p622_p2, %p618_p13 }
  0x1c   : > { %293 = vmatpush.msra.mxu0 %v177_v3  ;;  %555 = vmatpush.msra.mxu1 %v177_v3  ;;  %v148_v18 = vld [vmem:[%s744_s5 + $0x18] sm:$0xff]  ;;  %v149_v22 = vld [vmem:[%s744_s5 + $0x20] sm:$0xff]  ;;  %v150_v26 = vld [vmem:[%s744_s5 + $0x28] sm:$0xff] }
  0x1d   : > { %508 = vmatmul.msk.f32.vlgmr.msra.gmra.mxu0 %vm181_vm0, %v145_v6  ;;  %516 = vmatmul.msk.f32.vlgmr.msra.gmra.mxu1 %vm181_vm0, %v153_v7  ;;  %v156_v19 = vld [vmem:[%s744_s5 + $0x58] sm:$0xff]  ;;  %v157_v23 = vld [vmem:[%s744_s5 + $0x60] sm:$0xff]  ;;  %v158_v27 = vld [vmem:[%s744_s5 + $0x68] sm:$0xff] }
  0x1e   : > { %v167_v28 = vld [vmem:[%s744_s5 + $0xb0] sm:$0xff]  ;;  %v168_v32 = vld [vmem:[%s744_s5 + $0xb8] sm:$0xff] }
  0x1f   : > { %v175_v29 = vld [vmem:[%s744_s5 + $0xf0] sm:$0xff]  ;;  %v176_v33 = vld [vmem:[%s744_s5 + $0xf8] sm:$0xff] }
  0x20   : > { %v151_v30 = vld [vmem:[%s744_s5 + $0x30] sm:$0xff]  ;;  %v152_v34 = vld [vmem:[%s744_s5 + $0x38] sm:$0xff] }
  0x21   : > { %v159_v31 = vld [vmem:[%s744_s5 + $0x70] sm:$0xff]  ;;  %v160_v35 = vld [vmem:[%s744_s5 + $0x78] sm:$0xff] }
  0x23   : > { %525 = vmatmul.msk.f32.gmra.mxu2 %vm181_vm0, %v162_v8  ;;  %533 = vmatmul.msk.f32.gmra.mxu3 %vm181_vm0, %v170_v9 }
  0x25   : > { %509 = vmatmul.msk.f32.gmra.mxu0 %vm181_vm0, %v146_v10  ;;  %517 = vmatmul.msk.f32.gmra.mxu1 %vm181_vm0, %v154_v11 }
  0x2b   : > { %526 = vmatmul.msk.f32.gmra.mxu2 %vm181_vm0, %v163_v12  ;;  %534 = vmatmul.msk.f32.gmra.mxu3 %vm181_vm0, %v171_v13 }
  0x2d   : > { %510 = vmatmul.msk.f32.gmra.mxu0 %vm181_vm0, %v147_v14  ;;  %518 = vmatmul.msk.f32.gmra.mxu1 %vm181_vm0, %v155_v15 }
  0x33   : > { %527 = vmatmul.msk.f32.gmra.mxu2 %vm181_vm0, %v164_v16  ;;  %535 = vmatmul.msk.f32.gmra.mxu3 %vm181_vm0, %v172_v17 }
  0x35   : > { %511 = vmatmul.msk.f32.gmra.mxu0 %vm181_vm0, %v148_v18  ;;  %519 = vmatmul.msk.f32.gmra.mxu1 %vm181_vm0, %v156_v19 }
  0x3b   : > { %528 = vmatmul.msk.f32.gmra.mxu2 %vm181_vm0, %v165_v20  ;;  %536 = vmatmul.msk.f32.gmra.mxu3 %vm181_vm0, %v173_v21 }
  0x3d   : > { %512 = vmatmul.msk.f32.gmra.mxu0 %vm181_vm0, %v149_v22  ;;  %520 = vmatmul.msk.f32.gmra.mxu1 %vm181_vm0, %v157_v23 }
  0x43   : > { %529 = vmatmul.msk.f32.gmra.mxu2 %vm181_vm0, %v166_v24  ;;  %537 = vmatmul.msk.f32.gmra.mxu3 %vm181_vm0, %v174_v25 }
  0x45   : > { %513 = vmatmul.msk.f32.gmra.mxu0 %vm181_vm0, %v150_v26  ;;  %521 = vmatmul.msk.f32.gmra.mxu1 %vm181_vm0, %v158_v27 }
  0x4b   : > { %530 = vmatmul.msk.f32.gmra.mxu2 %vm181_vm0, %v167_v28  ;;  %538 = vmatmul.msk.f32.gmra.mxu3 %vm181_vm0, %v175_v29 }
  0x4d   : > { %514 = vmatmul.msk.f32.gmra.mxu0 %vm181_vm0, %v151_v30  ;;  %522 = vmatmul.msk.f32.gmra.mxu1 %vm181_vm0, %v159_v31 }
  0x53   : > { %531 = vmatmul.msk.f32.gmra.mxu2 %vm181_vm0, %v168_v32  ;;  %539 = vmatmul.msk.f32.gmra.mxu3 %vm181_vm0, %v176_v33 }
  0x55   : > { %515 = vmatmul.msk.f32.gmra.mxu0 %vm181_vm0, %v152_v34  ;;  %523 = vmatmul.msk.f32.gmra.mxu1 %vm181_vm0, %v160_v35 }
  0x9a   : > { %v295_v36 = vpop.f32.mrf.mxu0  ;;  %v319_v37 = vpop.f32.mrf.mxu1 }
  0x9b   : > { %391 = vst [vmem:[%s813_s8] sm:$0xff] %v295_v36 }
  0x9c   : > { %399 = vst [vmem:[%s813_s8 + $0x40] sm:$0xff] %v319_v37 }
  0x9e   : > { %v343_v38 = vpop.f32.mrf.mxu2  ;;  %v367_v39 = vpop.f32.mrf.mxu3 }
  0x9f   : > { %407 = vst [vmem:[%s813_s8 + $0x80] sm:$0xff] %v343_v38 }
  0xa0   : > { %415 = vst [vmem:[%s813_s8 + $0xc0] sm:$0xff] %v367_v39 }
  0xa2   : > { %v298_v40 = vpop.f32.mrf.mxu0  ;;  %v322_v41 = vpop.f32.mrf.mxu1 }
  0xa3   : > { %392 = vst [vmem:[%s813_s8 + $0x8] sm:$0xff] %v298_v40 }
  0xa4   : > { %400 = vst [vmem:[%s813_s8 + $0x48] sm:$0xff] %v322_v41 }
  0xa6   : > { %v346_v42 = vpop.f32.mrf.mxu2  ;;  %v370_v43 = vpop.f32.mrf.mxu3 }
  0xa7   : > { %408 = vst [vmem:[%s813_s8 + $0x88] sm:$0xff] %v346_v42 }
  0xa8   : > { %416 = vst [vmem:[%s813_s8 + $0xc8] sm:$0xff] %v370_v43 }
  0xaa   : > { %v301_v44 = vpop.f32.mrf.mxu0  ;;  %v325_v45 = vpop.f32.mrf.mxu1 }
  0xab   : > { %393 = vst [vmem:[%s813_s8 + $0x10] sm:$0xff] %v301_v44 }
  0xac   : > { %401 = vst [vmem:[%s813_s8 + $0x50] sm:$0xff] %v325_v45 }
  0xae   : > { %v349_v46 = vpop.f32.mrf.mxu2  ;;  %v373_v47 = vpop.f32.mrf.mxu3 }
  0xaf   : > { %409 = vst [vmem:[%s813_s8 + $0x90] sm:$0xff] %v349_v46 }
  0xb0   : > { %417 = vst [vmem:[%s813_s8 + $0xd0] sm:$0xff] %v373_v47 }
  0xb2   : > { %v304_v48 = vpop.f32.mrf.mxu0  ;;  %v328_v49 = vpop.f32.mrf.mxu1 }
  0xb3   : > { %394 = vst [vmem:[%s813_s8 + $0x18] sm:$0xff] %v304_v48 }
  0xb4   : > { %402 = vst [vmem:[%s813_s8 + $0x58] sm:$0xff] %v328_v49 }
  0xb6   : > { %v352_v50 = vpop.f32.mrf.mxu2  ;;  %v376_v51 = vpop.f32.mrf.mxu3 }
  0xb7   : > { %410 = vst [vmem:[%s813_s8 + $0x98] sm:$0xff] %v352_v50 }
  0xb8   : > { %418 = vst [vmem:[%s813_s8 + $0xd8] sm:$0xff] %v376_v51 }
  0xba   : > { %v307_v52 = vpop.f32.mrf.mxu0  ;;  %v331_v53 = vpop.f32.mrf.mxu1 }
  0xbb   : > { %395 = vst [vmem:[%s813_s8 + $0x20] sm:$0xff] %v307_v52 }
  0xbc   : > { %403 = vst [vmem:[%s813_s8 + $0x60] sm:$0xff] %v331_v53 }
  0xbe   : > { %v355_v54 = vpop.f32.mrf.mxu2  ;;  %v379_v55 = vpop.f32.mrf.mxu3 }
  0xbf   : > { %411 = vst [vmem:[%s813_s8 + $0xa0] sm:$0xff] %v355_v54 }
  0xc0   : > { %419 = vst [vmem:[%s813_s8 + $0xe0] sm:$0xff] %v379_v55 }
  0xc2   : > { %v310_v56 = vpop.f32.mrf.mxu0  ;;  %v334_v57 = vpop.f32.mrf.mxu1 }
  0xc3   : > { %396 = vst [vmem:[%s813_s8 + $0x28] sm:$0xff] %v310_v56 }
  0xc4   : > { %404 = vst [vmem:[%s813_s8 + $0x68] sm:$0xff] %v334_v57 }
  0xc6   : > { %v358_v58 = vpop.f32.mrf.mxu2  ;;  %v382_v59 = vpop.f32.mrf.mxu3 }
  0xc7   : > { %412 = vst [vmem:[%s813_s8 + $0xa8] sm:$0xff] %v358_v58 }
  0xc8   : > { %420 = vst [vmem:[%s813_s8 + $0xe8] sm:$0xff] %v382_v59 }
  0xca   : > { %v313_v60 = vpop.f32.mrf.mxu0  ;;  %v337_v61 = vpop.f32.mrf.mxu1 }
  0xcb   : > { %397 = vst [vmem:[%s813_s8 + $0x30] sm:$0xff] %v313_v60 }
  0xcc   : > { %405 = vst [vmem:[%s813_s8 + $0x70] sm:$0xff] %v337_v61 }
  0xce   : > { %v361_v62 = vpop.f32.mrf.mxu2  ;;  %v385_v63 = vpop.f32.mrf.mxu3 }
  0xcf   : > { %413 = vst [vmem:[%s813_s8 + $0xb0] sm:$0xff] %v361_v62 }
  0xd0   : > { %421 = vst [vmem:[%s813_s8 + $0xf0] sm:$0xff] %v385_v63 }
  0xd2   : > { %v316_v0 = vpop.f32.mrf.mxu0  ;;  %v340_v1 = vpop.f32.mrf.mxu1 }
  0xd3   : > { %398 = vst [vmem:[%s813_s8 + $0x38] sm:$0xff] %v316_v0 }
  0xd4   : > { %406 = vst [vmem:[%s813_s8 + $0x78] sm:$0xff] %v340_v1 }
  0xd6   : > { %v364_v2 = vpop.f32.mrf.mxu2  ;;  %v388_v3 = vpop.f32.mrf.mxu3 }
  0xd7   : > { %414 = vst [vmem:[%s813_s8 + $0xb8] sm:$0xff] %v364_v2 }
  0xd8   : > { %422 = vst [vmem:[%s813_s8 + $0xf8] sm:$0xff] %v388_v3 }
  0xd9   : > { %626 = shalt.err (!%p623_p3)
}
  0xda   : > { %s663_s3 = smov 128   ;;  %s664_s4 = smov 8  }
  0xdb   : > { %558 = dma.vmem_to_hbm [thread:$0]  (%p718_p5), %s437_s22, 4096, %s439_s23, %s424_s13, %s663_s3, %s663_s3, %s664_s4  }
  0xdc PF: > { %p564_p4 = scmp.ge.s32.totalorder %s661_s12, 2  ;;  %s453_s5 = sand.u32 1, %s649_s9  }
  0xdd   : > { %s454_s6 = scalar_lea.sflag [#allocation3], %s453_s5 }
  0xde   : > { %p561_p7 = pnand %p564_p4, %p722_p6 }
  0xe0   : > { %p562_p8 = pneg %p561_p7 }
  0xe2   : > { %644 = dma.done.wait (%p562_p8), %s454_s6, 4096  }
  0xe3   : > { %646 = vsyncadd (%p562_p8), %s454_s6, 4294963200  ;;  %p12_p9 = scmp.ge.s32.totalorder %s705_s15, 4   ;;  %s886_s9 = smov %s653_s10 }
  0xe4   : > { %s887_s10 = smov %s657_s11  ;;  %s888_s11 = smov %s716_s18 }
  0xe5   : > { %s889_s12 = smov %s705_s15  ;;  %14 = sbr.rel (!%p12_p9) target bundleno = 3 (0x3), region = 63 }
  0xea   :  { %460 = vsyncpa [#allocation3], 1 }
  0xeb   :  { %462 = vsyncpa [#allocation3 + $0x1], 1 }

</bundles_post_ra>
